<compile_context>
chip_gen: v7x
topology: tpu7x:2x2x1
jax: 0.10.0
libtpu: 0.0.40
codegen_flags: <defaults>
</compile_context>

<pallas_src>
import functools

import jax
import jax.numpy as jnp
from jax.experimental import pallas as pl
from jax.experimental.pallas import tpu as pltpu


def _channel_attention_kernel(x_ref, w1t_ref, w2t_ref, o_ref, *, hw):
    # x_ref  : (Bt, C, HW)  input slab (lane-padding tail handled by Mosaic)
    # w1t_ref: (C, Cr)      first 1x1-conv weight, pre-transposed
    # w2t_ref: (Cr, C)      second 1x1-conv weight, pre-transposed
    x = x_ref[...]
    bt = x.shape[0]
    xf = x.astype(jnp.float32)

    # AdaptiveAvgPool2d(1) / AdaptiveMaxPool2d(1) over the flattened spatial
    # axis.  The block's last dim equals the full HW extent, so reductions are
    # exact on the logical shape — no explicit lane mask needed.
    avg = jnp.sum(xf, axis=-1) * (1.0 / float(hw))        # (Bt, C)
    mx = jnp.max(xf, axis=-1)                             # (Bt, C)

    # Shared MLP: Conv1x1(C->Cr, no bias) -> ReLU -> Conv1x1(Cr->C, no bias),
    # one fused matmul for all Bt avg/max vectors.
    pooled = jnp.concatenate([avg, mx], axis=0)           # (2*Bt, C)
    h = jnp.dot(pooled, w1t_ref[...],
                preferred_element_type=jnp.float32)       # (2*Bt, Cr)
    h = jnp.maximum(h, 0.0)
    o = jnp.dot(h, w2t_ref[...],
                preferred_element_type=jnp.float32)       # (2*Bt, C)

    # avg_out + max_out, sigmoid, channel-wise rescale (lane broadcast).
    gate = jax.nn.sigmoid(o[:bt] + o[bt:])                # (Bt, C)
    o_ref[...] = (xf * gate[:, :, None]).astype(o_ref.dtype)


def _chip_config():
    """Generation-aware budgets.  v5e/v6e: 1 TC, 128 MiB.  v7x: 2 TCs, 64 MiB."""
    try:
        vmem = int(pltpu.get_tpu_info().vmem_capacity_bytes)
    except Exception:
        vmem = 128 << 20
    if vmem <= (96 << 20):           # v7x-class: 64 MiB per TensorCore, 2 TCs
        return {"num_cores": 2,
                "block_budget": 24 << 20,
                "vmem_limit_cap": 46 << 20}
    return {"num_cores": 1,          # v5e / v6e: 128 MiB, single TensorCore
            "block_budget": 48 << 20,
            "vmem_limit_cap": 100 << 20}


def _pick_bt(B, C, HW, cfg, itemsize):
    """Batch elements per grid step and pipeline depth for the x/out blocks."""
    cp = ((C + 7) // 8) * 8
    hwl = ((HW + 127) // 128) * 128
    slab = cp * hwl * itemsize                 # one (1, C, HW) VMEM slab
    bufs = 2                                   # default: double-buffered
    if 2 * 2 * slab > cfg["block_budget"]:
        # A single batch element does not fit double-buffered: single-buffer
        # the x/out blocks (halves residency).
        # TODO(synk): two-pass HW-tiled fallback when even a single-buffered
        # (1, C, HW) slab exceeds the per-core VMEM budget.
        bufs = 1
    per_b = 2 * bufs * slab                    # in + out blocks per batch elem
    max_bt = max(1, cfg["block_budget"] // per_b)
    divisors = [d for d in range(1, B + 1) if B % d == 0 and d <= max_bt]
    if not divisors:
        divisors = [1]
    if cfg["num_cores"] > 1 and B >= 2:
        # Keep an even number of grid steps so both TensorCores stay busy.
        even = [d for d in divisors if (B // d) % 2 == 0]
        if even:
            return max(even), bufs, per_b
    return max(divisors), bufs, per_b


def channel_attention(x_nchw, w1, w2):
    """x_nchw: (B, C, H, W); w1: (C//r, C); w2: (C, C//r).  Returns (B,C,H,W)."""
    B, C, H, W = x_nchw.shape
    Cr = w1.shape[0]
    HW = H * W
    dtype = x_nchw.dtype
    itemsize = jnp.dtype(dtype).itemsize

    # Free contiguous view; no pad / slice HBM passes in the wrapper.
    x3 = x_nchw.reshape(B, C, HW)

    # Pre-transpose the 1x1-conv weights once (no in-kernel transposes).
    w1t = jnp.asarray(w1, jnp.float32).T                  # (C, Cr)
    w2t = jnp.asarray(w2, jnp.float32).T                  # (Cr, C)

    cfg = _chip_config()
    Bt, bufs, per_b = _pick_bt(B, C, HW, cfg, itemsize)
    grid = (B // Bt,)

    weight_bytes = 2 * 2 * (C * Cr * 4)                   # both weights, 2-buffered
    resident = Bt * per_b + weight_bytes
    vmem_limit = int(min(max(32 << 20, resident + (4 << 20)),
                         cfg["vmem_limit_cap"]))

    x_spec_kwargs = {}
    if bufs == 1:
        x_spec_kwargs["pipeline_mode"] = pl.Buffered(1)

    kernel = functools.partial(_channel_attention_kernel, hw=HW)

    out = pl.pallas_call(
        kernel,
        out_shape=jax.ShapeDtypeStruct((B, C, HW), dtype),
        grid_spec=pltpu.PrefetchScalarGridSpec(
            num_scalar_prefetch=0,
            grid=grid,
            in_specs=[
                pl.BlockSpec((Bt, C, HW), lambda b: (b, 0, 0), **x_spec_kwargs),
                pl.BlockSpec((C, Cr), lambda b: (0, 0)),
                pl.BlockSpec((Cr, C), lambda b: (0, 0)),
            ],
            out_specs=pl.BlockSpec((Bt, C, HW), lambda b: (b, 0, 0),
                                   **x_spec_kwargs),
        ),
        compiler_params=pltpu.CompilerParams(
            dimension_semantics=("parallel",),
            vmem_limit_bytes=vmem_limit,
        ),
    )(x3, w1t, w2t)

    return out.reshape(B, C, H, W)


def channel_attention_ref(x, w1, w2):
    """Plain-JAX reference (mirrors the PyTorch forward)."""
    avg = jnp.mean(x, axis=(2, 3))                 # (B, C)
    mx = jnp.max(x, axis=(2, 3))                   # (B, C)

    def fc(v):                                     # v: (B, C)
        h = jnp.maximum(v @ w1.T, 0.0)             # (B, C/r)
        return h @ w2.T                            # (B, C)

    gate = jax.nn.sigmoid(fc(avg) + fc(mx))        # (B, C)
    return x * gate[:, :, None, None]


if __name__ == "__main__":
    B, C, H, W = 2, 32, 16, 16
    reduction_ratio = 8
    Cr = C // reduction_ratio

    key = jax.random.PRNGKey(0)
    kx, k1, k2 = jax.random.split(key, 3)
    x = jax.random.normal(kx, (B, C, H, W), dtype=jnp.float32)
    # 1x1-conv weights (Conv2d kernels of shape (out, in, 1, 1), squeezed).
    w1 = 0.1 * jax.random.normal(k1, (Cr, C), dtype=jnp.float32)
    w2 = 0.1 * jax.random.normal(k2, (C, Cr), dtype=jnp.float32)

    y = channel_attention(x, w1, w2)
    y = jax.block_until_ready(y)

    y_ref = channel_attention_ref(x, w1, w2)
    assert y.shape == (B, C, H, W)
    assert jnp.allclose(y, y_ref, atol=1e-5, rtol=1e-5)

    print("KERNEL_OK")
</pallas_src>

<mosaic_0001>
module attributes {stable_mosaic.version = 11 : i64} {
  func.func @_channel_attention_kernel(%arg0: i32, %arg1: memref<2x32x256xf32, #tpu.memory_space<vmem>>, %arg2: memref<32x4xf32, #tpu.memory_space<vmem>>, %arg3: memref<4x32xf32, #tpu.memory_space<vmem>>, %arg4: memref<2x32x256xf32, #tpu.memory_space<vmem>>) attributes {dimension_semantics = [#tpu.dimension_semantics<parallel>], iteration_bounds = array<i64: 1>, scalar_prefetch = 0 : i64, scratch_operands = 0 : i64, tpu.core_type = #tpu.core_type<tc>, window_params = [{transform_indices = @transform_0, window_bounds = array<i64: 2, 32, 256>}, {pipeline_mode = #tpu.pipeline_mode<synchronous>, transform_indices = @transform_1, window_bounds = array<i64: 32, 4>}, {pipeline_mode = #tpu.pipeline_mode<synchronous>, transform_indices = @transform_2, window_bounds = array<i64: 4, 32>}, {transform_indices = @transform_3, window_bounds = array<i64: 2, 32, 256>}]} {
    %c0 = arith.constant 0 : index
    %c0_0 = arith.constant 0 : index
    %c0_1 = arith.constant 0 : index
    %0 = vector.load %arg1[%c0, %c0_0, %c0_1] : memref<2x32x256xf32, #tpu.memory_space<vmem>>, vector<2x32x256xf32>
    %cst = arith.constant dense<0.000000e+00> : vector<2x32xf32>
    %1 = vector.multi_reduction <add>, %0, %cst [2] : vector<2x32x256xf32> to vector<2x32xf32>
    %cst_2 = arith.constant 3.906250e-03 : f32
    %2 = vector.broadcast %cst_2 : f32 to vector<2x32xf32>
    %3 = arith.mulf %1, %2 : vector<2x32xf32>
    %cst_3 = arith.constant dense<0xFF800000> : vector<2x32xf32>
    %4 = vector.multi_reduction <maximumf>, %0, %cst_3 [2] : vector<2x32x256xf32> to vector<2x32xf32>
    %5 = tpu.concatenate %3, %4 in 0 : vector<2x32xf32>, vector<2x32xf32> -> vector<4x32xf32>
    %c0_4 = arith.constant 0 : index
    %c0_5 = arith.constant 0 : index
    %6 = vector.load %arg2[%c0_4, %c0_5] : memref<32x4xf32, #tpu.memory_space<vmem>>, vector<32x4xf32>
    %cst_6 = arith.constant dense<0.000000e+00> : vector<4x4xf32>
    %7 = tpu.matmul %5, %6, %cst_6 {dimension_numbers = #tpu.dot_dimension_numbers<[1], [0], [0], [1], [0, 0, 1, 1], [], []>} : vector<4x32xf32>, vector<32x4xf32>, vector<4x4xf32> -> vector<4x4xf32>
    %cst_7 = arith.constant 0.000000e+00 : f32
    %8 = vector.broadcast %cst_7 : f32 to vector<4x4xf32>
    %9 = arith.maximumf %7, %8 : vector<4x4xf32>
    %c0_8 = arith.constant 0 : index
    %c0_9 = arith.constant 0 : index
    %10 = vector.load %arg3[%c0_8, %c0_9] : memref<4x32xf32, #tpu.memory_space<vmem>>, vector<4x32xf32>
    %cst_10 = arith.constant dense<0.000000e+00> : vector<4x32xf32>
    %11 = tpu.matmul %9, %10, %cst_10 {dimension_numbers = #tpu.dot_dimension_numbers<[1], [0], [0], [1], [0, 0, 1, 1], [], []>} : vector<4x4xf32>, vector<4x32xf32>, vector<4x32xf32> -> vector<4x32xf32>
    %12 = vector.extract_strided_slice %11 {offsets = [0, 0], sizes = [2, 32], strides = [1, 1]} : vector<4x32xf32> to vector<2x32xf32>
    %13 = vector.extract_strided_slice %11 {offsets = [2, 0], sizes = [2, 32], strides = [1, 1]} : vector<4x32xf32> to vector<2x32xf32>
    %14 = arith.addf %12, %13 : vector<2x32xf32>
    %15 = arith.negf %14 : vector<2x32xf32>
    %16 = math.exp %15 : vector<2x32xf32>
    %cst_11 = arith.constant 1.000000e+00 : f32
    %17 = vector.broadcast %cst_11 : f32 to vector<2x32xf32>
    %18 = arith.addf %17, %16 : vector<2x32xf32>
    %19 = arith.divf %17, %18 : vector<2x32xf32>
    %20 = vector.shape_cast %19 : vector<2x32xf32> to vector<2x32x1xf32>
    %21 = vector.broadcast %20 : vector<2x32x1xf32> to vector<2x32x256xf32>
    %22 = arith.mulf %0, %21 : vector<2x32x256xf32>
    %c0_12 = arith.constant 0 : index
    %c0_13 = arith.constant 0 : index
    %c0_14 = arith.constant 0 : index
    %23 = vector.load %arg4[%c0_12, %c0_13, %c0_14] : memref<2x32x256xf32, #tpu.memory_space<vmem>>, vector<2x32x256xf32>
    tpu.vector_store %arg4[%c0_12, %c0_13, %c0_14], %22 {strides = array<i32>} : memref<2x32x256xf32, #tpu.memory_space<vmem>>, vector<2x32x256xf32>,
    return
  }
  func.func @transform_0(%arg0: i32) -> (i32, i32, i32) {
    %c0_i32 = arith.constant 0 : i32
    %c0_i32_0 = arith.constant 0 : i32
    %c0_i32_1 = arith.constant 0 : i32
    return %arg0, %c0_i32, %c0_i32_0 : i32, i32, i32
  }
  func.func @transform_1(%arg0: i32) -> (i32, i32) {
    %c0_i32 = arith.constant 0 : i32
    %c0_i32_0 = arith.constant 0 : i32
    %c0_i32_1 = arith.constant 0 : i32
    return %c0_i32, %c0_i32_0 : i32, i32
  }
  func.func @transform_2(%arg0: i32) -> (i32, i32) {
    %c0_i32 = arith.constant 0 : i32
    %c0_i32_0 = arith.constant 0 : i32
    %c0_i32_1 = arith.constant 0 : i32
    return %c0_i32, %c0_i32_0 : i32, i32
  }
  func.func @transform_3(%arg0: i32) -> (i32, i32, i32) {
    %c0_i32 = arith.constant 0 : i32
    %c0_i32_0 = arith.constant 0 : i32
    %c0_i32_1 = arith.constant 0 : i32
    return %arg0, %c0_i32, %c0_i32_0 : i32, i32, i32
  }
}

</mosaic_0001>

<bundles_post_ra>
// kernel: tpu_custom_call.1
= control target key start
LH: loop header
LB: loop body
LE: loop exit
PB: predicated region body
PF: predicated region fallthrough
CT: control target
= control target key end

     0   :  { %8 = vsyncpa [#allocation3], 0  ;;  %s730_s0 = inlined_call_operand.hbm [shape: f32[2,32,256], index: 0, kind: input, shape index: {}]   ;;  %s731_s1 = inlined_call_operand.vmem [shape: f32[32,4], index: 1, kind: input, shape index: {}]   ;;  %s732_s2 = inlined_call_operand.vmem [shape: f32[4,32], index: 2, kind: input, shape index: {}]   ;;  %s733_s3 = inlined_call_operand.hbm [shape: f32[2,32,256], index: 3, kind: output, shape index: {}]  }
   0x1   :  { %9 = vsyncpa [#allocation4], 0  ;;  %s556_s12 = smov [#allocation2]   ;;  %s508_s16 = scalar_lea.hbm %s730_s0, 2048 }
   0x2   :  { %s15_s13 = sshll.u32 %s556_s12, 4  ;;  %p509_p0 = scmp.ne.s32.totalorder %s730_s0, %s508_s16  ;;  %s16_s13 = int_to_ptr.vmem [resolvable:$true] %s15_s13 }
   0x3   :  { %p512_p1 = scmp.lt.u32.totalorder %s508_s16, %s730_s0 }
   0x5   :  { %p514_p2 = pnand %p512_p1, %p509_p0 }
   0x7   :  { %517 = shalt.err (!%p514_p2)
}
   0x8   :  { %s518_s21 = scalar_lea.vmem %s16_s13, 2048  ;;  %p523_p4 = scmp.lt.s32.totalorder %s16_s13, %s16_s13 }
   0x9   :  { %p519_p3 = scmp.ne.s32.totalorder %s16_s13, %s518_s21  ;;  %p524_p5 = scmp.lt.s32.totalorder %s518_s21, %s518_s21 }
   0xb   :  { %p525_p6 = por %p524_p5, %p523_p4 }
   0xd   :  { %p526_p7 = pnand %p525_p6, %p519_p3 }
   0xf   :  { %529 = shalt.err (!%p526_p7)
}
  0x10   :  { %s557_s22 = smov 256   ;;  %s558_s23 = smov 16  }
  0x11   :  { %21 = dma.hbm_to_vmem [thread:$0]  %s730_s0, 2048, %s16_s13, [#allocation3], %s557_s22, %s557_s22, %s558_s23  }
  0x12   :  { %552 = dma.done.wait [#allocation3], 2048  }
  0x13   :  { %553 = vsyncadd [#allocation3], 4294965248  ;;  %v598_v0 = vld [vmem:[#allocation2 + $0x40] sm:$0xff]  ;;  %v600_v1 = vld [vmem:[#allocation2 + $0x48] sm:$0xff]  ;;  %v559_v35 = vmov 0.0|0.0   ;;  %vm560_vm0 = vmmov 0   ;;  %v109_v45 = vlaneseq }
  0x14   :  { %v602_v2 = vld [vmem:[#allocation2] sm:$0xff]  ;;  %v57_v3 = vadd.f32 %v600_v1, %v598_v0  ;;  %v606_v4 = vld [vmem:[#allocation2 + $0x8] sm:$0xff]  ;;  %v608_v5 = vld [vmem:[#allocation2 + $0x50] sm:$0xff]  ;;  %v89_v27 = vmax.f32 %v598_v0, %v600_v1  ;;  %491 = vmatprep.subr.bf16.mxu0 %v559_v35  ;;  %v561_v39 = vmov 0.0   ;;  %vm120_vm1 = vcmask 130112  }
  0x15   :  { %v610_v6 = vld [vmem:[#allocation2 + $0x58] sm:$0xff]  ;;  %v45_v7 = vadd.f32 %v606_v4, %v602_v2  ;;  %v614_v8 = vld [vmem:[#allocation2 + $0x10] sm:$0xff]  ;;  %v622_v12 = vld [vmem:[#allocation2 + $0x60] sm:$0xff]  ;;  %v77_v25 = vmax.f32 %v602_v2, %v606_v4  ;;  %483 = vmatprep.mubr.msk.f32.mxu0 %vm560_vm0, %v561_v39  ;;  %486 = vmatprep.subr.mxu1 %v561_v39  ;;  %v110_v48 = vand.u32 127, %v109_v45  ;;  %v674_v50 = vshrl.u32 %v109_v45, 7 }
  0x16   :  { %v616_v9 = vld [vmem:[#allocation2 + $0x18] sm:$0xff]  ;;  %58 = vadd.xlane.f32.xlu1 %v57_v3  ;;  %v60_v10 = vadd.f32 %v610_v6, %v608_v5  ;;  %v624_v13 = vld [vmem:[#allocation2 + $0x68] sm:$0xff]  ;;  %v626_v14 = vld [vmem:[#allocation2 + $0x20] sm:$0xff]  ;;  %v92_v26 = vmax.f32 %v608_v5, %v610_v6  ;;  %488 = vmatprep.mubr.msk.f32.mxu1 %vm560_vm0, %v561_v39  ;;  %vm127_vm2 = vcmask 195712   ;;  %vm134_vm3 = vcmask 261312  }
  0x17   :  { %46 = vadd.xlane.f32.xlu0 %v45_v7  ;;  %v48_v11 = vadd.f32 %v616_v9, %v614_v8  ;;  %v628_v15 = vld [vmem:[#allocation2 + $0x28] sm:$0xff]  ;;  %v63_v16 = vadd.f32 %v624_v13, %v622_v12  ;;  %v634_v18 = vld [vmem:[#allocation2 + $0x70] sm:$0xff]  ;;  %v636_v19 = vld [vmem:[#allocation2 + $0x78] sm:$0xff]  ;;  %v80_v24 = vmax.f32 %v614_v8, %v616_v9  ;;  %v95_v28 = vmax.f32 %v622_v12, %v624_v13 }
  0x18   :  { %v51_v17 = vadd.f32 %v628_v15, %v626_v14  ;;  %v638_v20 = vld [vmem:[#allocation2 + $0x30] sm:$0xff]  ;;  %v640_v21 = vld [vmem:[#allocation2 + $0x38] sm:$0xff]  ;;  %v66_v22 = vadd.f32 %v636_v19, %v634_v18  ;;  %v83_v29 = vmax.f32 %v626_v14, %v628_v15  ;;  %v98_v30 = vmax.f32 %v634_v18, %v636_v19  ;;  %v209_v32 = vld [vmem:[%s731_s1] sm:$0xff] }
  0x19   :  { %v54_v23 = vadd.f32 %v640_v21, %v638_v20  ;;  %v86_v31 = vmax.f32 %v638_v20, %v640_v21  ;;  %v210_v33 = vld [vmem:[%s731_s1 + $0x8] sm:$0xff]  ;;  %v211_v36 = vld [vmem:[%s731_s1 + $0x10] sm:$0xff]  ;;  %v212_v37 = vld [vmem:[%s731_s1 + $0x18] sm:$0xff]  ;;  %v115_v51 = vadd.s32 4294967288, %v110_v48  ;;  %v122_v52 = vadd.s32 4294967280, %v110_v48 }
  0x1a   :  { %61 = vadd.xlane.f32.xlu1 %v60_v10  ;;  %v492_v34 = vpack.c.bf16 %v210_v33, %v209_v32  ;;  %v495_v38 = vpack.c.bf16 %v212_v37, %v211_v36  ;;  %v129_v54 = vadd.s32 4294967272, %v110_v48  ;;  %v113_v56 = vsub.s32 %v110_v48, %v674_v50 }
  0x1b   :  { %49 = vadd.xlane.f32.xlu0 %v48_v11  ;;  %v118_v57 = vsub.s32 %v115_v51, %v674_v50  ;;  %v125_v59 = vsub.s32 %v122_v52, %v674_v50  ;;  %vm155_vm4 = vcmask 1041409   ;;  %vm204_vm5 = vcmask 1043459  }
  0x1c   :  { %493 = vmatpush3.bf16.msra.mxu0 %v492_v34  ;;  %v132_v10 = vsub.s32 %v129_v54, %v674_v50  ;;  %vm207_vm6 = vcmask 1041408   ;;  %vm213_vm7 = vcmask 261120   ;;  %vm293_vm8 = vcmask 1043456  }
  0x1d   :  { %494 = vmatprep.subr.bf16.mxu0 %v559_v35  ;;  %vm289_vm9 = vcmask 31744  }
  0x1e   :  { %64 = vadd.xlane.f32.xlu1 %v63_v16 }
  0x1f   :  { %52 = vadd.xlane.f32.xlu0 %v51_v17 }
  0x20   :  { %496 = vmatpush3.bf16.msra.mxu0 %v495_v38 }
  0x22   :  { %67 = vadd.xlane.f32.xlu1 %v66_v22 }
  0x23   :  { %55 = vadd.xlane.f32.xlu0 %v54_v23 }
  0x26   :  { %81 = vmax.xlane.f32.xlu1 %v80_v24 }
  0x27   :  { %78 = vmax.xlane.f32.xlu0 %v77_v25 }
  0x2a   :  { %93 = vmax.xlane.f32.xlu1 %v92_v26 }
  0x2b   :  { %90 = vmax.xlane.f32.xlu0 %v89_v27 }
  0x2e   :  { %96 = vmax.xlane.f32.xlu1 %v95_v28 }
  0x2f   :  { %84 = vmax.xlane.f32.xlu0 %v83_v29 }
  0x32   :  { %99 = vmax.xlane.f32.xlu1 %v98_v30 }
  0x33   :  { %87 = vmax.xlane.f32.xlu0 %v86_v31 }
  0xa3   :  { %v59_v40 = vpop.xlane.xlu1 %58 }
  0xa4   :  { %v47_v41 = vpop.xlane.xlu0 %46  ;;  %v73_v60 = vmul.f32 0.00390625, %v59_v40 }
  0xa5   :  { %v69_v61 = vmul.f32 0.00390625, %v47_v41 }
  0xa6   :  { %v139_v23 = vrot.slane %v73_v60, %v113_v56 }
  0xa7   :  { %v62_v42 = vpop.xlane.xlu1 %61  ;;  %v114_v24 = vrot.slane %v69_v61, %v113_v56 }
  0xa8   :  { %v50_v43 = vpop.xlane.xlu0 %49  ;;  %v74_v58 = vmul.f32 0.00390625, %v62_v42 }
  0xa9   :  { %v70_v62 = vmul.f32 0.00390625, %v50_v43 }
  0xaa   :  { %v143_v22 = vrot.slane %v74_v58, %v118_v57  ;;  %v288_v58 = vld [vmem:[%s732_s2] sm:$0xf]  ;;  %s562_s2 = smov [#allocation5]  }
  0xab   :  { %v65_v44 = vpop.xlane.xlu1 %64  ;;  %v119_v25 = vrot.slane %v70_v62, %v118_v57  ;;  %487 = vmatpush3.msk.msra.mxu1 %vm293_vm8, %v288_v58  ;;  %s452_s7 = sshll.u32 %s562_s2, 4  ;;  %s453_s7 = int_to_ptr.vmem [resolvable:$true] %s452_s7 }
  0xac   :  { %v53_v46 = vpop.xlane.xlu0 %52  ;;  %v75_v63 = vmul.f32 0.00390625, %v65_v44  ;;  %v144_v37 = vsel %vm120_vm1, %v143_v22, %v139_v23  ;;  %s530_s8 = scalar_lea.vmem %s453_s7, 2048  ;;  %p535_p9 = scmp.lt.s32.totalorder %s453_s7, %s453_s7 }
  0xad   :  { %v71_v7 = vmul.f32 0.00390625, %v53_v46  ;;  %v121_v39 = vsel %vm120_vm1, %v119_v25, %v114_v24  ;;  %v398_v24 = vsub.s32 1, %v674_v50  ;;  %p531_p8 = scmp.ne.s32.totalorder %s453_s7, %s530_s8  ;;  %p536_p10 = scmp.lt.s32.totalorder %s530_s8, %s530_s8 }
  0xae   :  { %v148_v26 = vrot.slane %v75_v63, %v125_v59 }
  0xaf   :  { %v68_v47 = vpop.xlane.xlu1 %67  ;;  %v126_v28 = vrot.slane %v71_v7, %v125_v59  ;;  %p537_p11 = por %p536_p10, %p535_p9 }
  0xb0   :  { %v56_v49 = vpop.xlane.xlu0 %55  ;;  %v76_v11 = vmul.f32 0.00390625, %v68_v47  ;;  %v149_v40 = vsel %vm127_vm2, %v148_v26, %v144_v37 }
  0xb1   :  { %v72_v17 = vmul.f32 0.00390625, %v56_v49  ;;  %v128_v42 = vsel %vm127_vm2, %v126_v28, %v121_v39  ;;  %p538_p12 = pnand %p537_p11, %p531_p8 }
  0xb2   :  { %v153_v29 = vrot.slane %v76_v11, %v132_v10 }
  0xb3   :  { %v82_v53 = vpop.xlane.xlu1 %81  ;;  %v133_v33 = vrot.slane %v72_v17, %v132_v10  ;;  %v379_v17 = vsub.s32 0, %v674_v50 }
  0xb4   :  { %v79_v55 = vpop.xlane.xlu0 %78  ;;  %v173_v34 = vrot.slane %v82_v53, %v118_v57  ;;  %v154_v43 = vsel %vm134_vm3, %v153_v29, %v149_v40 }
  0xb5   :  { %v169_v35 = vrot.slane %v79_v55, %v113_v56  ;;  %v135_v47 = vsel %vm134_vm3, %v133_v33, %v128_v42 }
  0xb6   :  { %v156_v55 = vsel %vm155_vm4, %v154_v43, %v135_v47 }
  0xb7   :  { %v94_v3 = vpop.xlane.xlu1 %93  ;;  %v174_v48 = vsel %vm120_vm1, %v173_v34, %v169_v35 }
  0xb8   :  { %v91_v16 = vpop.xlane.xlu0 %90  ;;  %v192_v30 = vrot.slane %v94_v3, %v118_v57 }
  0xb9   :  { %v188_v31 = vrot.slane %v91_v16, %v113_v56 }
  0xbb   :  { %v97_v27 = vpop.xlane.xlu1 %96  ;;  %v193_v44 = vsel %vm120_vm1, %v192_v30, %v188_v31 }
  0xbc   :  { %v85_v32 = vpop.xlane.xlu0 %84  ;;  %v197_v36 = vrot.slane %v97_v27, %v125_v59 }
  0xbd   :  { %v178_v38 = vrot.slane %v85_v32, %v125_v59 }
  0xbe   :  { %v198_v49 = vsel %vm127_vm2, %v197_v36, %v193_v44 }
  0xbf   :  { %v100_v41 = vpop.xlane.xlu1 %99  ;;  %v179_v52 = vsel %vm127_vm2, %v178_v38, %v174_v48 }
  0xc0   :  { %v202_v45 = vrot.slane %v100_v41, %v132_v10  ;;  %v88_v46 = vpop.xlane.xlu0 %87 }
  0xc1   :  { %v183_v51 = vrot.slane %v88_v46, %v132_v10 }
  0xc2   :  { %v203_v53 = vsel %vm134_vm3, %v202_v45, %v198_v49 }
  0xc3   :  { %v184_v54 = vsel %vm134_vm3, %v183_v51, %v179_v52 }
  0xc4   :  { %v205_v56 = vsel %vm204_vm5, %v203_v53, %v184_v54 }
  0xc5   :  { %v208_v57 = vsel %vm207_vm6, %v156_v55, %v205_v56 }
  0xc6   :  { %484 = vmatmul.mubr.msk.f32.vlgmr.msra.gmra.mrb[0].mxu0 %vm213_vm7, %v208_v57 }
 0x199   :  { %v283_v59 = vpop.f32.mrb[0].mxu0 }
 0x19a   :  { %v287_v60 = vmax.f32 %v283_v59, 0.0  ;;  %v485_v61 = vpop.f32.mrb[1].mxu0 }
 0x19c   :  { %489 = vmatmul.mubr.msk.f32.vlgmr.msra.gmra.mrb[0].mxu1 %vm289_vm9, %v287_v60 }
 0x26f   :  { %v363_v62 = vpop.f32.mrb[0].mxu1 }
 0x270   :  { %v368_v63 = vrot.slane %v363_v62, 2  ;;  %v490_v3 = vpop.f32.mrb[1].mxu1 }
 0x272   :  { %v370_v7 = vadd.f32 %v368_v63, %v363_v62 }
 0x274   :  { %v467_v10 = vmul.f32 -1.442695, %v370_v7 }
 0x276   :  { %504 = vpow2.f32 %v467_v10 }
 0x280   :  { %v505_v11 = vpop.eup %504 }
 0x281   :  { %v374_v16 = vadd.f32 1.0, %v505_v11 }
 0x283   :  { %506 = vrcp.f32 %v374_v16 }
 0x28d   :  { %v507_v22 = vpop.eup %506 }
 0x28e   :  { %v380_v23 = vrot.slane %v507_v22, %v379_v17  ;;  %v399_v25 = vrot.slane %v507_v22, %v398_v24 }
 0x290   :  { %386 = vbcast.lane.b32.xlu1 %v380_v23, 264  ;;  %382 = vbcast.lane.b32.xlu0 %v380_v23, 256 }
 0x294   :  { %390 = vbcast.lane.b32.xlu1 %v380_v23, 272  ;;  %401 = vbcast.lane.b32.xlu0 %v399_v25, 256 }
 0x298   :  { %394 = vbcast.lane.b32.xlu1 %v380_v23, 280  ;;  %409 = vbcast.lane.b32.xlu0 %v399_v25, 272 }
 0x29c   :  { %405 = vbcast.lane.b32.xlu1 %v399_v25, 264 }
 0x2a0   :  { %413 = vbcast.lane.b32.xlu1 %v399_v25, 280 }
 0x302   :  { %v387_v26 = vpop.permute.xlu1 %386  ;;  %v383_v27 = vpop.permute.xlu0 %382 }
 0x303   :  { %v417_v28 = vmul.f32 %v387_v26, %v614_v8  ;;  %v418_v29 = vmul.f32 %v387_v26, %v616_v9  ;;  %v415_v30 = vmul.f32 %v383_v27, %v602_v2  ;;  %v416_v31 = vmul.f32 %v383_v27, %v606_v4 }
 0x305   :  { %433 = vst [vmem:[#allocation5 + $0x10] sm:$0xff] %v417_v28  ;;  %434 = vst [vmem:[#allocation5 + $0x18] sm:$0xff] %v418_v29 }
 0x306   :  { %431 = vst [vmem:[#allocation5] sm:$0xff] %v415_v30  ;;  %432 = vst [vmem:[#allocation5 + $0x8] sm:$0xff] %v416_v31  ;;  %v391_v50 = vpop.permute.xlu1 %390  ;;  %v402_v32 = vpop.permute.xlu0 %401 }
 0x307   :  { %v419_v33 = vmul.f32 %v391_v50, %v626_v14  ;;  %v420_v34 = vmul.f32 %v391_v50, %v628_v15  ;;  %v423_v35 = vmul.f32 %v402_v32, %v598_v0  ;;  %v424_v8 = vmul.f32 %v402_v32, %v600_v1 }
 0x309   :  { %435 = vst [vmem:[#allocation5 + $0x20] sm:$0xff] %v419_v33  ;;  %436 = vst [vmem:[#allocation5 + $0x28] sm:$0xff] %v420_v34 }
 0x30a   :  { %439 = vst [vmem:[#allocation5 + $0x40] sm:$0xff] %v423_v35  ;;  %440 = vst [vmem:[#allocation5 + $0x48] sm:$0xff] %v424_v8  ;;  %v395_v2 = vpop.permute.xlu1 %394  ;;  %v410_v4 = vpop.permute.xlu0 %409 }
 0x30b   :  { %v421_v9 = vmul.f32 %v395_v2, %v638_v20  ;;  %v422_v36 = vmul.f32 %v395_v2, %v640_v21  ;;  %v427_v37 = vmul.f32 %v410_v4, %v622_v12  ;;  %v428_v14 = vmul.f32 %v410_v4, %v624_v13 }
 0x30d   :  { %437 = vst [vmem:[#allocation5 + $0x30] sm:$0xff] %v421_v9  ;;  %438 = vst [vmem:[#allocation5 + $0x38] sm:$0xff] %v422_v36 }
 0x30e   :  { %443 = vst [vmem:[#allocation5 + $0x60] sm:$0xff] %v427_v37  ;;  %444 = vst [vmem:[#allocation5 + $0x68] sm:$0xff] %v428_v14  ;;  %v406_v0 = vpop.permute.xlu1 %405 }
 0x30f   :  { %v425_v1 = vmul.f32 %v406_v0, %v608_v5  ;;  %v426_v15 = vmul.f32 %v406_v0, %v610_v6 }
 0x311   :  { %441 = vst [vmem:[#allocation5 + $0x50] sm:$0xff] %v425_v1  ;;  %442 = vst [vmem:[#allocation5 + $0x58] sm:$0xff] %v426_v15 }
 0x312   :  { %v414_v20 = vpop.permute.xlu1 %413 }
 0x313   :  { %v429_v21 = vmul.f32 %v414_v20, %v634_v18  ;;  %v430_v12 = vmul.f32 %v414_v20, %v636_v19 }
 0x315   :  { %445 = vst [vmem:[#allocation5 + $0x70] sm:$0xff] %v429_v21  ;;  %446 = vst [vmem:[#allocation5 + $0x78] sm:$0xff] %v430_v12 }
 0x316   :  { %541 = shalt.err (!%p538_p12)
}
 0x317   :  { %s542_s11 = scalar_lea.hbm %s733_s3, 2048 }
 0x318   :  { %p543_p13 = scmp.ne.s32.totalorder %s733_s3, %s542_s11  ;;  %p546_p0 = scmp.lt.u32.totalorder %s542_s11, %s733_s3 }
 0x31a   :  { %p548_p1 = pnand %p546_p0, %p543_p13 }
 0x31c   :  { %551 = shalt.err (!%p548_p1)
}
 0x31d   :  { %458 = dma.vmem_to_hbm [thread:$0]  %s453_s7, 2048, %s733_s3, [#allocation4], %s557_s22, %s557_s22, %s558_s23  }
 0x31e   :  { %554 = dma.done.wait [#allocation4], 2048  }
 0x31f   :  { %555 = vsyncadd [#allocation4], 4294965248 }
 0x320   :  { %462 = vsyncpa [#allocation3], 1 }
 0x321   :  { %463 = vsyncpa [#allocation4], 1 }

</bundles_post_ra>
